<compile_context>
chip_gen: v7x
topology: tpu7x:2x2x1
jax: 0.10.0
libtpu: 0.0.40
codegen_flags: <defaults>
</compile_context>

<pallas_src>
import functools

import jax
import jax.numpy as jnp
from jax.experimental import pallas as pl
from jax.experimental.pallas import tpu as pltpu

LANE = 128      # lane-dense feature padding
SUBLANE = 8     # sublane multiple for the batch axis
TILE_K_MAX = 2048   # default reduction-tile for the encoder GEMM (multiple of 128)


def _round_up(x, m):
    return (x + m - 1) // m * m


def _pad2d_bf16(w, rows, cols):
    """Zero-pad an (r, c) f32 matrix to (rows, cols) and cast to bf16."""
    out = jnp.zeros((rows, cols), jnp.bfloat16)
    return out.at[: w.shape[0], : w.shape[1]].set(w.astype(jnp.bfloat16))


# ------------------------------ fused kernel -------------------------------- #

def _fused_forward_kernel(num_layers_per_head, *refs):
    """K-tiled encoder GEMM + ReLU + head chains; activations stay in VMEM.

    refs = (x_ref, w_enc_ref, *head_weight_refs, enc_out_ref, *head_out_refs)
      x_ref:            (tile_m, tile_k)      bf16   block index (i, k)
      w_enc_ref:        (tile_k, ENC_pad)     bf16   block index (k, 0)
      head weight refs: (in_pad, out_pad)     bf16   full, resident
      enc_out_ref:      (tile_m, ENC_pad)     f32    block index (i, 0)  <- accumulator
      head_out_refs[h]: (tile_m, OUT_pad[h])  f32    block index (i, 0)
    """
    total_w = 1 + sum(num_layers_per_head)
    x_ref = refs[0]
    w_refs = refs[1:1 + total_w]
    out_refs = refs[1 + total_w:]
    enc_out_ref = out_refs[0]
    head_out_refs = out_refs[1:]

    k = pl.program_id(1)
    nk = pl.num_programs(1)

    # P3 accumulator pattern: enc_out_ref is the f32 accumulator (its
    # index_map ignores k so the block stays resident across the reduction).
    @pl.when(k == 0)
    def _():
        enc_out_ref[...] = jnp.zeros_like(enc_out_ref)

    enc_out_ref[...] += jnp.dot(x_ref[...], w_refs[0][...],
                                preferred_element_type=jnp.float32)

    # Finalize: ReLU the encoder output, then run every head chain on-chip.
    @pl.when(k == nk - 1)
    def _():
        enc = jnp.maximum(enc_out_ref[...], 0.0)
        enc_out_ref[...] = enc
        wi = 1
        for h, n_layers in enumerate(num_layers_per_head):
            act = enc
            for _ in range(n_layers):
                act = jnp.maximum(
                    jnp.dot(act.astype(jnp.bfloat16), w_refs[wi][...],
                            preferred_element_type=jnp.float32),
                    0.0)
                wi += 1
            head_out_refs[h][...] = act.astype(head_out_refs[h].dtype)


def fused_forward(feats, w_encoder_pad, head_weights_pad, encoder_dim,
                  head_out_dims, tile_k_max=TILE_K_MAX):
    """Run the fused encoder + heads chain in one pallas_call.

    feats:            (M, K) f32 un-padded features (rows = batch, cols = wav samples).
    w_encoder_pad:    (K_pad, ENC_pad) bf16 (K_pad a multiple of min(tile_k_max, K_pad)).
    head_weights_pad: list (per head) of lists of (in_pad, out_pad) bf16 weights.
    Returns (encoded (M, encoder_dim) f32, [ (M, d) f32 per head ]).
    """
    M, K = feats.shape
    K_pad, enc_pad = w_encoder_pad.shape
    assert K <= K_pad

    # Reduction tiling for the encoder GEMM.
    tile_k = min(tile_k_max, K_pad)
    assert K_pad % tile_k == 0 and tile_k % LANE == 0
    grid_k = K_pad // tile_k

    # Batch tiling: pad M to a sublane multiple; tile so larger batches shard
    # across v7x's two TensorCores via the "parallel" grid axis.
    tile_m = min(_round_up(max(M, 1), SUBLANE), 128)
    M_pad = _round_up(M, tile_m)
    grid_m = M_pad // tile_m

    x_pad = jnp.zeros((M_pad, K_pad), jnp.bfloat16)
    x_pad = x_pad.at[:M, :K].set(feats.astype(jnp.bfloat16))

    num_layers_per_head = tuple(len(ws) for ws in head_weights_pad)
    flat_ws = [w_encoder_pad] + [w for ws in head_weights_pad for w in ws]
    head_pads = [ws[-1].shape[1] for ws in head_weights_pad]

    out_shapes = tuple(
        [jax.ShapeDtypeStruct((M_pad, enc_pad), jnp.float32)]
        + [jax.ShapeDtypeStruct((M_pad, p), jnp.float32) for p in head_pads])

    in_specs = (
        [pl.BlockSpec((tile_m, tile_k), lambda i, k: (i, k)),        # activations
         pl.BlockSpec((tile_k, enc_pad), lambda i, k: (k, 0))]       # encoder weight slice
        + [pl.BlockSpec(w.shape, lambda i, k: (0, 0))                # head weights (resident)
           for w in flat_ws[1:]])
    out_specs = tuple(
        [pl.BlockSpec((tile_m, enc_pad), lambda i, k: (i, 0))]
        + [pl.BlockSpec((tile_m, p), lambda i, k: (i, 0)) for p in head_pads])

    flops = sum(2 * M_pad * w.shape[0] * w.shape[1] for w in flat_ws)
    bytes_accessed = (
        M_pad * K_pad * 2                                        # bf16 input
        + sum(w.shape[0] * w.shape[1] * 2 for w in flat_ws)      # bf16 weights
        + sum(M_pad * int(s.shape[1]) * 4 for s in out_shapes))  # f32 outputs

    outs = pl.pallas_call(
        functools.partial(_fused_forward_kernel, num_layers_per_head),
        out_shape=out_shapes,
        grid=(grid_m, grid_k),
        in_specs=in_specs,
        out_specs=out_specs,
        compiler_params=pltpu.CompilerParams(
            dimension_semantics=("parallel", "arbitrary")),
        cost_estimate=pl.CostEstimate(
            flops=flops, transcendentals=0, bytes_accessed=bytes_accessed),
    )(x_pad, *flat_ws)

    encoded = outs[0][:M, :encoder_dim]
    projected = [o[:M, :d] for o, d in zip(outs[1:], head_out_dims)]
    return encoded, projected


# --------------------------- Module in JAX/Pallas --------------------------- #

class ContrastiveFingerprintPallas:
    """JAX/Pallas re-implementation of ContrastiveFingerprint.forward.

    The encoder is synthetic (the PyTorch module takes an arbitrary encoder):
    squeeze the channel axis, then Linear(wav_len -> encoder_dim, bias=False)
    + ReLU, fused into the same Pallas kernel as the projection heads.
    """

    def __init__(self, key, wav_len, encoder_dim=32,
                 head_dims=((64, 16),), temperature=0.1, feat_extract_head=-2,
                 tile_k_max=TILE_K_MAX):
        self.encoder_dim = encoder_dim
        self.head_dims = [list(d) for d in head_dims]
        self.temperature = temperature
        self.feat_extract_head = feat_extract_head
        self.tile_k_max = tile_k_max
        if feat_extract_head == -2:
            self.embed_dim = sum(d[-1] for d in self.head_dims)
        elif feat_extract_head == -1:
            self.embed_dim = encoder_dim
        else:
            # Final dim of that head (the PyTorch code stores the whole list).
            self.embed_dim = self.head_dims[feat_extract_head][-1]

        # f32 master weights, stored (in, out), no bias.
        n_w = 1 + sum(len(d) for d in self.head_dims)
        keys = jax.random.split(key, n_w)
        ki = 0
        self.w_encoder = jax.random.normal(
            keys[ki], (wav_len, encoder_dim), jnp.float32) * 0.02
        ki += 1
        self.head_weights = []
        for dims in self.head_dims:
            ws, last = [], encoder_dim
            for d in dims:
                ws.append(jax.random.normal(keys[ki], (last, d),
                                            jnp.float32) * 0.02)
                ki += 1
                last = d
            self.head_weights.append(ws)

        # Padded bf16 copies actually fed to the MXU (padded once, at init).
        # K is padded so it divides evenly into tile_k reduction slices.
        k_pad = _round_up(wav_len, LANE)
        tile_k = min(self.tile_k_max, k_pad)
        k_pad = _round_up(k_pad, tile_k)
        enc_pad = _round_up(encoder_dim, LANE)
        self.w_encoder_pad = _pad2d_bf16(self.w_encoder, k_pad, enc_pad)
        self.head_weights_pad = []
        for ws in self.head_weights:
            padded, in_pad = [], enc_pad
            for w in ws:
                out_pad = _round_up(w.shape[1], LANE)
                padded.append(_pad2d_bf16(w, in_pad, out_pad))
                in_pad = out_pad
            self.head_weights_pad.append(padded)
        self.head_out_dims = [dims[-1] for dims in self.head_dims]

    def forward(self, x):
        wav = x['audio']
        if wav.ndim == 4:
            wav = wav.reshape(-1, 1, wav.shape[-1])
        elif wav.ndim == 5:
            # TODO(synk): 2-D (spectrogram) encoder path has no synthetic
            # encoder here; fail loudly instead of silently dropping an axis.
            raise NotImplementedError(
                "5-D spectrogram input path not supported by the synthetic "
                "1-D encoder")
        feats = wav.reshape(wav.shape[0], wav.shape[-1])  # squeeze channel (glue)
        encoded, projected = fused_forward(
            feats, self.w_encoder_pad, self.head_weights_pad,
            self.encoder_dim, self.head_out_dims, self.tile_k_max)
        return {'projected': projected, 'encoded': encoded, 'wav': wav}

    def extract_features(self, x, head=None):
        if head is None:
            head = self.feat_extract_head
        out_ = self.forward({'audio': x})
        if head == -1:
            return {'encoded': out_['encoded']}
        if head == -2:
            return {'encoded': jnp.concatenate(out_['projected'], axis=-1)}
        return {'encoded': out_['projected'][head]}


# ---------------------------------- main ------------------------------------ #

def _bf16_linear_relu(a, w):
    # Matches kernel numerics: bf16 operands, f32 accumulation.
    ab = a.astype(jnp.bfloat16).astype(jnp.float32)
    wb = w.astype(jnp.bfloat16).astype(jnp.float32)
    return jnp.maximum(ab @ wb, 0.0)


def _check_model(model, audio, tight_atol=5e-3, loose_atol=5e-2):
    out = model.forward({'audio': audio})
    jax.block_until_ready(out['encoded'])
    for p in out['projected']:
        jax.block_until_ready(p)
    jax.block_until_ready(out['wav'])

    B_eff = audio.shape[0] * audio.shape[1]
    L = audio.shape[-1]
    assert out['wav'].shape == (B_eff, 1, L)
    assert out['encoded'].shape == (B_eff, model.encoder_dim)
    for proj, d in zip(out['projected'], model.head_out_dims):
        assert proj.shape == (B_eff, d)

    feats_ref = audio.reshape(-1, L)

    # Tight check against a bf16-operand reference (same numerics as kernel).
    enc_bf = _bf16_linear_relu(feats_ref, model.w_encoder)
    assert jnp.allclose(out['encoded'], enc_bf, atol=tight_atol), \
        float(jnp.max(jnp.abs(out['encoded'] - enc_bf)))
    for h, ws in enumerate(model.head_weights):
        act = enc_bf
        for w in ws:
            act = _bf16_linear_relu(act, w)
        assert jnp.allclose(out['projected'][h], act, atol=tight_atol), \
            float(jnp.max(jnp.abs(out['projected'][h] - act)))

    # Looser check against the pure-f32 module semantics.
    enc_f32 = jnp.maximum(feats_ref @ model.w_encoder, 0.0)
    assert jnp.allclose(out['encoded'], enc_f32, atol=loose_atol)
    for h, ws in enumerate(model.head_weights):
        act = enc_f32
        for w in ws:
            act = jnp.maximum(act @ w, 0.0)
        assert jnp.allclose(out['projected'][h], act, atol=loose_atol)
    return out


if __name__ == "__main__":
    key = jax.random.PRNGKey(0)
    k_param, k_param2, k_data, k_data2 = jax.random.split(key, 4)

    # Model 1: demo shapes, single reduction tile (grid_k == 1).
    B, VIEWS, L = 2, 2, 128          # audio: (batch, views, 1, L) -> 4-D input
    model = ContrastiveFingerprintPallas(
        k_param, wav_len=L, encoder_dim=32, head_dims=[[64, 16]],
        temperature=0.1, feat_extract_head=-2)
    audio = jax.random.normal(k_data, (B, VIEWS, 1, L), jnp.float32)
    _check_model(model, audio)

    # extract_features default path (concatenation of projected heads).
    feats_out = model.extract_features(audio)
    assert feats_out['encoded'].shape == (B * VIEWS, model.embed_dim)
    jax.block_until_ready(feats_out['encoded'])

    # Model 2: small tile_k forces the K-tiled accumulation path (grid_k = 3)
    # and two heads, still at small shapes.
    L2 = 384
    model2 = ContrastiveFingerprintPallas(
        k_param2, wav_len=L2, encoder_dim=48, head_dims=[[64, 16], [32]],
        temperature=0.1, feat_extract_head=-2, tile_k_max=128)
    audio2 = jax.random.normal(k_data2, (B, VIEWS, 1, L2), jnp.float32)
    _check_model(model2, audio2)
    feats_out2 = model2.extract_features(audio2, head=1)
    assert feats_out2['encoded'].shape == (B * VIEWS, 32)
    jax.block_until_ready(feats_out2['encoded'])

    print("KERNEL_OK")
</pallas_src>

<mosaic_0001>
module attributes {stable_mosaic.version = 11 : i64} {
  func.func @_fused_forward_kernel(%arg0: i32, %arg1: i32, %arg2: memref<8x128xbf16, #tpu.memory_space<vmem>>, %arg3: memref<128x128xbf16, #tpu.memory_space<vmem>>, %arg4: memref<128x128xbf16, #tpu.memory_space<vmem>>, %arg5: memref<128x128xbf16, #tpu.memory_space<vmem>>, %arg6: memref<8x128xf32, #tpu.memory_space<vmem>>, %arg7: memref<8x128xf32, #tpu.memory_space<vmem>>) attributes {dimension_semantics = [#tpu.dimension_semantics<parallel>, #tpu.dimension_semantics<arbitrary>], iteration_bounds = array<i64: 1, 1>, scalar_prefetch = 0 : i64, scratch_operands = 0 : i64, tpu.core_type = #tpu.core_type<tc>, window_params = [{transform_indices = @transform_0, window_bounds = array<i64: 8, 128>}, {transform_indices = @transform_1, window_bounds = array<i64: 128, 128>}, {pipeline_mode = #tpu.pipeline_mode<synchronous>, transform_indices = @transform_2, window_bounds = array<i64: 128, 128>}, {pipeline_mode = #tpu.pipeline_mode<synchronous>, transform_indices = @transform_3, window_bounds = array<i64: 128, 128>}, {transform_indices = @transform_4, window_bounds = array<i64: 8, 128>}, {transform_indices = @transform_5, window_bounds = array<i64: 8, 128>}]} {
    %c0_i32 = arith.constant 0 : i32
    %0 = arith.cmpi eq, %arg1, %c0_i32 : i32
    %1 = arith.extui %0 : i1 to i32
    %c0_i32_0 = arith.constant 0 : i32
    %2 = arith.cmpi ne, %1, %c0_i32_0 : i32
    scf.if %2 {
      %cst_10 = arith.constant 0.000000e+00 : f32
      %12 = vector.broadcast %cst_10 : f32 to vector<8x128xf32>
      %c0_11 = arith.constant 0 : index
      %c0_12 = arith.constant 0 : index
      %13 = vector.load %arg6[%c0_11, %c0_12] : memref<8x128xf32, #tpu.memory_space<vmem>>, vector<8x128xf32>
      tpu.vector_store %arg6[%c0_11, %c0_12], %12 {strides = array<i32>} : memref<8x128xf32, #tpu.memory_space<vmem>>, vector<8x128xf32>,
    } else {
    }
    %c0 = arith.constant 0 : index
    %c0_1 = arith.constant 0 : index
    %3 = vector.load %arg6[%c0, %c0_1] : memref<8x128xf32, #tpu.memory_space<vmem>>, vector<8x128xf32>
    %c0_2 = arith.constant 0 : index
    %c0_3 = arith.constant 0 : index
    %4 = vector.load %arg2[%c0_2, %c0_3] : memref<8x128xbf16, #tpu.memory_space<vmem>>, vector<8x128xbf16>
    %c0_4 = arith.constant 0 : index
    %c0_5 = arith.constant 0 : index
    %5 = vector.load %arg3[%c0_4, %c0_5] : memref<128x128xbf16, #tpu.memory_space<vmem>>, vector<128x128xbf16>
    %cst = arith.constant dense<0.000000e+00> : vector<8x128xf32>
    %6 = tpu.matmul %4, %5, %cst {dimension_numbers = #tpu.dot_dimension_numbers<[1], [0], [0], [1], [0, 0, 1, 1], [], []>} : vector<8x128xbf16>, vector<128x128xbf16>, vector<8x128xf32> -> vector<8x128xf32>
    %7 = arith.addf %3, %6 : vector<8x128xf32>
    %c0_6 = arith.constant 0 : index
    %c0_7 = arith.constant 0 : index
    %8 = vector.load %arg6[%c0_6, %c0_7] : memref<8x128xf32, #tpu.memory_space<vmem>>, vector<8x128xf32>
    tpu.vector_store %arg6[%c0_6, %c0_7], %7 {strides = array<i32>} : memref<8x128xf32, #tpu.memory_space<vmem>>, vector<8x128xf32>,
    %c0_i32_8 = arith.constant 0 : i32
    %9 = arith.cmpi eq, %arg1, %c0_i32_8 : i32
    %10 = arith.extui %9 : i1 to i32
    %c0_i32_9 = arith.constant 0 : i32
    %11 = arith.cmpi ne, %10, %c0_i32_9 : i32
    scf.if %11 {
      %c0_10 = arith.constant 0 : index
      %c0_11 = arith.constant 0 : index
      %12 = vector.load %arg6[%c0_10, %c0_11] : memref<8x128xf32, #tpu.memory_space<vmem>>, vector<8x128xf32>
      %cst_12 = arith.constant 0.000000e+00 : f32
      %13 = vector.broadcast %cst_12 : f32 to vector<8x128xf32>
      %14 = arith.maximumf %12, %13 : vector<8x128xf32>
      %c0_13 = arith.constant 0 : index
      %c0_14 = arith.constant 0 : index
      %15 = vector.load %arg6[%c0_13, %c0_14] : memref<8x128xf32, #tpu.memory_space<vmem>>, vector<8x128xf32>
      tpu.vector_store %arg6[%c0_13, %c0_14], %14 {strides = array<i32>} : memref<8x128xf32, #tpu.memory_space<vmem>>, vector<8x128xf32>,
      %16 = arith.truncf %14 : vector<8x128xf32> to vector<8x128xbf16>
      %c0_15 = arith.constant 0 : index
      %c0_16 = arith.constant 0 : index
      %17 = vector.load %arg4[%c0_15, %c0_16] : memref<128x128xbf16, #tpu.memory_space<vmem>>, vector<128x128xbf16>
      %cst_17 = arith.constant dense<0.000000e+00> : vector<8x128xf32>
      %18 = tpu.matmul %16, %17, %cst_17 {dimension_numbers = #tpu.dot_dimension_numbers<[1], [0], [0], [1], [0, 0, 1, 1], [], []>} : vector<8x128xbf16>, vector<128x128xbf16>, vector<8x128xf32> -> vector<8x128xf32>
      %cst_18 = arith.constant 0.000000e+00 : f32
      %19 = vector.broadcast %cst_18 : f32 to vector<8x128xf32>
      %20 = arith.maximumf %18, %19 : vector<8x128xf32>
      %21 = arith.truncf %20 : vector<8x128xf32> to vector<8x128xbf16>
      %c0_19 = arith.constant 0 : index
      %c0_20 = arith.constant 0 : index
      %22 = vector.load %arg5[%c0_19, %c0_20] : memref<128x128xbf16, #tpu.memory_space<vmem>>, vector<128x128xbf16>
      %cst_21 = arith.constant dense<0.000000e+00> : vector<8x128xf32>
      %23 = tpu.matmul %21, %22, %cst_21 {dimension_numbers = #tpu.dot_dimension_numbers<[1], [0], [0], [1], [0, 0, 1, 1], [], []>} : vector<8x128xbf16>, vector<128x128xbf16>, vector<8x128xf32> -> vector<8x128xf32>
      %cst_22 = arith.constant 0.000000e+00 : f32
      %24 = vector.broadcast %cst_22 : f32 to vector<8x128xf32>
      %25 = arith.maximumf %23, %24 : vector<8x128xf32>
      %c0_23 = arith.constant 0 : index
      %c0_24 = arith.constant 0 : index
      %26 = vector.load %arg7[%c0_23, %c0_24] : memref<8x128xf32, #tpu.memory_space<vmem>>, vector<8x128xf32>
      tpu.vector_store %arg7[%c0_23, %c0_24], %25 {strides = array<i32>} : memref<8x128xf32, #tpu.memory_space<vmem>>, vector<8x128xf32>,
    } else {
    }
    return
  }
  func.func @transform_0(%arg0: i32, %arg1: i32) -> (i32, i32) {
    %c0_i32 = arith.constant 0 : i32
    return %arg0, %arg1 : i32, i32
  }
  func.func @transform_1(%arg0: i32, %arg1: i32) -> (i32, i32) {
    %c0_i32 = arith.constant 0 : i32
    %c0_i32_0 = arith.constant 0 : i32
    return %arg1, %c0_i32 : i32, i32
  }
  func.func @transform_2(%arg0: i32, %arg1: i32) -> (i32, i32) {
    %c0_i32 = arith.constant 0 : i32
    %c0_i32_0 = arith.constant 0 : i32
    %c0_i32_1 = arith.constant 0 : i32
    return %c0_i32, %c0_i32_0 : i32, i32
  }
  func.func @transform_3(%arg0: i32, %arg1: i32) -> (i32, i32) {
    %c0_i32 = arith.constant 0 : i32
    %c0_i32_0 = arith.constant 0 : i32
    %c0_i32_1 = arith.constant 0 : i32
    return %c0_i32, %c0_i32_0 : i32, i32
  }
  func.func @transform_4(%arg0: i32, %arg1: i32) -> (i32, i32) {
    %c0_i32 = arith.constant 0 : i32
    %c0_i32_0 = arith.constant 0 : i32
    return %arg0, %c0_i32 : i32, i32
  }
  func.func @transform_5(%arg0: i32, %arg1: i32) -> (i32, i32) {
    %c0_i32 = arith.constant 0 : i32
    %c0_i32_0 = arith.constant 0 : i32
    return %arg0, %c0_i32 : i32, i32
  }
}

</mosaic_0001>

<bundles_post_ra>
// kernel: tpu_custom_call.1
= control target key start
LH: loop header
LB: loop body
LE: loop exit
PB: predicated region body
PF: predicated region fallthrough
CT: control target
= control target key end

     0   :  { %11 = vsyncpa [#allocation3], 0  ;;  %s876_s0 = inlined_call_operand.hbm [shape: bf16[8,128], index: 0, kind: input, shape index: {}]   ;;  %s877_s1 = inlined_call_operand.hbm [shape: bf16[128,128], index: 1, kind: input, shape index: {}]   ;;  %s878_s2 = inlined_call_operand.hbm [shape: bf16[128,128], index: 2, kind: input, shape index: {}]   ;;  %s879_s3 = inlined_call_operand.hbm [shape: bf16[128,128], index: 3, kind: input, shape index: {}]   ;;  %s880_s4 = inlined_call_operand.hbm [shape: f32[8,128], index: 4, kind: output, shape index: {0}]   ;;  %s881_s5 = inlined_call_operand.hbm [shape: f32[8,128], index: 5, kind: output, shape index: {1}]  }
   0x1   :  { %12 = vsyncpa [#allocation6], 0 }
   0x2   :  { %13 = vsyncpa [#allocation9], 0 }
   0x3   :  { %14 = vsyncpa [#allocation4], 0 }
   0x4   :  { %15 = vsyncpa [#allocation12], 0  ;;  %s725_s18 = smov [#allocation5]   ;;  %s583_s22 = scalar_lea.hbm %s877_s1, 1024 }
   0x5   :  { %s31_s19 = sshll.u32 %s725_s18, 4  ;;  %p584_p0 = scmp.ne.s32.totalorder %s877_s1, %s583_s22  ;;  %s32_s19 = int_to_ptr.vmem [resolvable:$true] %s31_s19 }
   0x6   :  { %p587_p1 = scmp.lt.u32.totalorder %s583_s22, %s877_s1 }
   0x8   :  { %p589_p2 = pnand %p587_p1, %p584_p0 }
   0xa   :  { %592 = shalt.err (!%p589_p2)
}
   0xb   :  { %s593_s27 = scalar_lea.vmem %s32_s19, 1024  ;;  %p598_p4 = scmp.lt.s32.totalorder %s32_s19, %s32_s19 }
   0xc   :  { %p594_p3 = scmp.ne.s32.totalorder %s32_s19, %s593_s27  ;;  %p599_p5 = scmp.lt.s32.totalorder %s593_s27, %s593_s27 }
   0xe   :  { %p600_p6 = por %p599_p5, %p598_p4 }
  0x10   :  { %p601_p7 = pnand %p600_p6, %p594_p3 }
  0x12   :  { %604 = shalt.err (!%p601_p7)
}
  0x13   :  { %s726_s28 = smov 64   ;;  %s727_s29 = smov 4  }
  0x14   :  { %37 = dma.hbm_to_vmem [thread:$0]  %s877_s1, 1024, %s32_s19, [#allocation6], %s726_s28, %s726_s28, %s727_s29  }
  0x15   :  { %s728_s7 = smov [#allocation2]   ;;  %s729_s9 = smov [#allocation7]  }
  0x16   :  { %s22_s8 = sshll.u32 %s728_s7, 4  ;;  %s43_s10 = sshll.u32 %s729_s9, 4  ;;  %s23_s8 = int_to_ptr.vmem [resolvable:$true] %s22_s8  ;;  %s44_s10 = int_to_ptr.vmem [resolvable:$true] %s43_s10 }
  0x17   :  { %s605_s13 = scalar_lea.hbm %s876_s0, 64 }
  0x18   :  { %p606_p8 = scmp.ne.s32.totalorder %s876_s0, %s605_s13  ;;  %p609_p9 = scmp.lt.u32.totalorder %s605_s13, %s876_s0 }
  0x1a   :  { %p611_p10 = pnand %p609_p9, %p606_p8 }
  0x1c   :  { %614 = shalt.err (!%p611_p10)
}
  0x1d   :  { %s615_s1 = scalar_lea.vmem %s23_s8, 64  ;;  %p620_p12 = scmp.lt.s32.totalorder %s23_s8, %s23_s8 }
  0x1e   :  { %p616_p11 = scmp.ne.s32.totalorder %s23_s8, %s615_s1  ;;  %p621_p13 = scmp.lt.s32.totalorder %s615_s1, %s615_s1 }
  0x20   :  { %p622_p0 = por %p621_p13, %p620_p12 }
  0x22   :  { %p623_p1 = pnand %p622_p0, %p616_p11 }
  0x24   :  { %626 = shalt.err (!%p623_p1)
}
  0x25   :  { %25 = dma.hbm_to_vmem [thread:$0]  %s876_s0, 64, %s23_s8, [#allocation3]  }
  0x26   :  { %s627_s22 = scalar_lea.hbm %s878_s2, 1024 }
  0x27   :  { %p628_p2 = scmp.ne.s32.totalorder %s878_s2, %s627_s22  ;;  %p631_p3 = scmp.lt.u32.totalorder %s627_s22, %s878_s2 }
  0x29   :  { %p633_p4 = pnand %p631_p3, %p628_p2 }
  0x2b   :  { %636 = shalt.err (!%p633_p4)
}
  0x2c   :  { %s637_s27 = scalar_lea.vmem %s44_s10, 1024  ;;  %p642_p6 = scmp.lt.s32.totalorder %s44_s10, %s44_s10 }
  0x2d   :  { %p638_p5 = scmp.ne.s32.totalorder %s44_s10, %s637_s27  ;;  %p643_p7 = scmp.lt.s32.totalorder %s637_s27, %s637_s27 }
  0x2f   :  { %p644_p8 = por %p643_p7, %p642_p6 }
  0x31   :  { %p645_p9 = pnand %p644_p8, %p638_p5 }
  0x33   :  { %648 = shalt.err (!%p645_p9)
}
  0x34   :  { %49 = dma.hbm_to_vmem [thread:$0]  %s878_s2, 1024, %s44_s10, [#allocation6], %s726_s28, %s726_s28, %s727_s29  }
  0x35   :  { %s730_s6 = smov [#allocation8]   ;;  %s649_s11 = scalar_lea.hbm %s879_s3, 1024 }
  0x36   :  { %s55_s7 = sshll.u32 %s730_s6, 4  ;;  %p650_p10 = scmp.ne.s32.totalorder %s879_s3, %s649_s11  ;;  %s56_s7 = int_to_ptr.vmem [resolvable:$true] %s55_s7 }
  0x37   :  { %p653_p11 = scmp.lt.u32.totalorder %s649_s11, %s879_s3 }
  0x39   :  { %p655_p12 = pnand %p653_p11, %p650_p10 }
  0x3b   :  { %658 = shalt.err (!%p655_p12)
}
  0x3c   :  { %s659_s16 = scalar_lea.vmem %s56_s7, 1024  ;;  %p664_p0 = scmp.lt.s32.totalorder %s56_s7, %s56_s7 }
  0x3d   :  { %p660_p13 = scmp.ne.s32.totalorder %s56_s7, %s659_s16  ;;  %p665_p1 = scmp.lt.s32.totalorder %s659_s16, %s659_s16 }
  0x3f   :  { %p666_p2 = por %p665_p1, %p664_p0 }
  0x41   :  { %p667_p3 = pnand %p666_p2, %p660_p13 }
  0x43   :  { %670 = shalt.err (!%p667_p3)
}
  0x44   :  { %61 = dma.hbm_to_vmem [thread:$0]  %s879_s3, 1024, %s56_s7, [#allocation9], %s726_s28, %s726_s28, %s727_s29  }
  0x45   :  { %715 = dma.done.wait [#allocation3], 64  }
  0x46   :  { %716 = vsyncadd [#allocation3], 4294967232 }
  0x47   :  { %717 = dma.done.wait [#allocation6], 2048  }
  0x48   :  { %718 = vsyncadd [#allocation6], 4294965248 }
  0x49   :  { %719 = dma.done.wait [#allocation9], 1024  }
  0x4a   :  { %720 = vsyncadd [#allocation9], 4294966272  ;;  %v731_v0 = vmov 0.0   ;;  %vm732_vm0 = vmmov 0   ;;  %v559_v1 = vld [vmem:[#allocation5] sm:$0xff]   ;;  %v560_v2 = vld [vmem:[#allocation5 + $0x8] sm:$0xff]  }
  0x4b   :  { %489 = vmatprep.subr.bf16.mxu0 %v731_v0  ;;  %505 = vmatprep.mubr.msk.bf16.mxu0 %vm732_vm0, %v731_v0  ;;  %v561_v3 = vld [vmem:[#allocation5 + $0x10] sm:$0xff]   ;;  %v567_v4 = vld [vmem:[#allocation7] sm:$0xff]   ;;  %v562_v5 = vld [vmem:[#allocation5 + $0x18] sm:$0xff]   ;;  %s733_s3 = smov [#allocation10]  }
  0x4c   :  { %509 = vmatprep.subr.bf16.mxu1 %v731_v0  ;;  %525 = vmatprep.mubr.msk.bf16.mxu1 %vm732_vm0, %v731_v0  ;;  %v568_v6 = vld [vmem:[#allocation7 + $0x8] sm:$0xff]   ;;  %v563_v7 = vld [vmem:[#allocation5 + $0x20] sm:$0xff]   ;;  %v569_v8 = vld [vmem:[#allocation7 + $0x10] sm:$0xff]   ;;  %s413_s28 = sshll.u32 %s733_s3, 4  ;;  %s414_s28 = int_to_ptr.vmem [resolvable:$true] %s413_s28 }
  0x4d   :  { %490 = vmatpush3.bf16.msra.mxu0 %v559_v1  ;;  %510 = vmatpush3.bf16.msra.mxu1 %v567_v4  ;;  %v564_v9 = vld [vmem:[#allocation5 + $0x28] sm:$0xff]   ;;  %v570_v10 = vld [vmem:[#allocation7 + $0x18] sm:$0xff]   ;;  %v565_v11 = vld [vmem:[#allocation5 + $0x30] sm:$0xff]   ;;  %s671_s29 = scalar_lea.vmem %s414_s28, 128  ;;  %p676_p5 = scmp.lt.s32.totalorder %s414_s28, %s414_s28 }
  0x4e   :  { %491 = vmatprep.subr.bf16.mxu0 %v731_v0  ;;  %511 = vmatprep.subr.bf16.mxu1 %v731_v0  ;;  %v566_v12 = vld [vmem:[#allocation5 + $0x38] sm:$0xff]   ;;  %v571_v14 = vld [vmem:[#allocation7 + $0x20] sm:$0xff]   ;;  %v572_v15 = vld [vmem:[#allocation7 + $0x28] sm:$0xff]   ;;  %p672_p4 = scmp.ne.s32.totalorder %s414_s28, %s671_s29  ;;  %p677_p6 = scmp.lt.s32.totalorder %s671_s29, %s671_s29 }
  0x4f   :  { %v81_v13 = vld [vmem:[#allocation2] sm:$0xf]  ;;  %v573_v16 = vld [vmem:[#allocation7 + $0x30] sm:$0xff]   ;;  %v575_v18 = vld [vmem:[#allocation8] sm:$0xff]  }
  0x50   :  { %v574_v17 = vld [vmem:[#allocation7 + $0x38] sm:$0xff]   ;;  %v576_v19 = vld [vmem:[#allocation8 + $0x8] sm:$0xff]   ;;  %v577_v20 = vld [vmem:[#allocation8 + $0x10] sm:$0xff]   ;;  %p678_p7 = por %p677_p6, %p676_p5 }
  0x51   :  { %492 = vmatpush3.bf16.msra.mxu0 %v560_v2  ;;  %512 = vmatpush3.bf16.msra.mxu1 %v568_v6  ;;  %v578_v21 = vld [vmem:[#allocation8 + $0x18] sm:$0xff]   ;;  %v579_v22 = vld [vmem:[#allocation8 + $0x20] sm:$0xff]   ;;  %v580_v23 = vld [vmem:[#allocation8 + $0x28] sm:$0xff]  }
  0x52   :  { %493 = vmatprep.subr.bf16.mxu0 %v731_v0  ;;  %513 = vmatprep.subr.bf16.mxu1 %v731_v0  ;;  %v581_v24 = vld [vmem:[#allocation8 + $0x30] sm:$0xff]   ;;  %v582_v31 = vld [vmem:[#allocation8 + $0x38] sm:$0xff]   ;;  %p679_p8 = pnand %p678_p7, %p672_p4 }
  0x55   :  { %494 = vmatpush3.bf16.msra.mxu0 %v561_v3  ;;  %514 = vmatpush3.bf16.msra.mxu1 %v569_v8 }
  0x56   :  { %495 = vmatprep.subr.bf16.mxu0 %v731_v0  ;;  %515 = vmatprep.subr.bf16.mxu1 %v731_v0 }
  0x59   :  { %496 = vmatpush3.bf16.msra.mxu0 %v562_v5  ;;  %516 = vmatpush3.bf16.msra.mxu1 %v570_v10 }
  0x5a   :  { %497 = vmatprep.subr.bf16.mxu0 %v731_v0  ;;  %517 = vmatprep.subr.bf16.mxu1 %v731_v0 }
  0x5d   :  { %498 = vmatpush3.bf16.msra.mxu0 %v563_v7  ;;  %518 = vmatpush3.bf16.msra.mxu1 %v571_v14 }
  0x5e   :  { %499 = vmatprep.subr.bf16.mxu0 %v731_v0  ;;  %519 = vmatprep.subr.bf16.mxu1 %v731_v0 }
  0x61   :  { %500 = vmatpush3.bf16.msra.mxu0 %v564_v9  ;;  %520 = vmatpush3.bf16.msra.mxu1 %v572_v15 }
  0x62   :  { %501 = vmatprep.subr.bf16.mxu0 %v731_v0  ;;  %521 = vmatprep.subr.bf16.mxu1 %v731_v0 }
  0x65   :  { %502 = vmatpush3.bf16.msra.mxu0 %v565_v11  ;;  %522 = vmatpush3.bf16.msra.mxu1 %v573_v16 }
  0x66   :  { %503 = vmatprep.subr.bf16.mxu0 %v731_v0  ;;  %523 = vmatprep.subr.bf16.mxu1 %v731_v0 }
  0x69   :  { %504 = vmatpush3.bf16.msra.mxu0 %v566_v12  ;;  %524 = vmatpush3.bf16.msra.mxu1 %v574_v17 }
  0x6a   :  { %529 = vmatprep.subr.bf16.mxu0 %v731_v0 }
  0x6c   :  { %506 = vmatmul.mubr.bf16.vlgmr.msra.gmra.mrb[0].mxu0 %v81_v13 }
  0x6d   :  { %545 = vmatprep.mubr.msk.bf16.mxu0 %vm732_vm0, %v731_v0  ;;  %530 = vmatpush3.bf16.msra.mxu0 %v575_v18 }
  0x6e   :  { %531 = vmatprep.subr.bf16.mxu0 %v731_v0 }
  0x71   :  { %532 = vmatpush3.bf16.msra.mxu0 %v576_v19 }
  0x72   :  { %533 = vmatprep.subr.bf16.mxu0 %v731_v0 }
  0x75   :  { %534 = vmatpush3.bf16.msra.mxu0 %v577_v20 }
  0x76   :  { %535 = vmatprep.subr.bf16.mxu0 %v731_v0 }
  0x79   :  { %536 = vmatpush3.bf16.msra.mxu0 %v578_v21 }
  0x7a   :  { %537 = vmatprep.subr.bf16.mxu0 %v731_v0 }
  0x7d   :  { %538 = vmatpush3.bf16.msra.mxu0 %v579_v22 }
  0x7e   :  { %539 = vmatprep.subr.bf16.mxu0 %v731_v0 }
  0x81   :  { %540 = vmatpush3.bf16.msra.mxu0 %v580_v23 }
  0x82   :  { %541 = vmatprep.subr.bf16.mxu0 %v731_v0 }
  0x85   :  { %542 = vmatpush3.bf16.msra.mxu0 %v581_v24 }
  0x86   :  { %543 = vmatprep.subr.bf16.mxu0 %v731_v0 }
  0x89   :  { %544 = vmatpush3.bf16.msra.mxu0 %v582_v31 }
 0x13f   :  { %v180_v25 = vpop.f32.mrb[0].mxu0 }
 0x140   :  { %v507_v26 = vpop.f32.mrb[1].mxu0  ;;  %v192_v29 = vmax.f32 %v180_v25, 0.0 }
 0x141   :  { %v183_v27 = vpop.f32.mrb[2].mxu0 }
 0x142   :  { %v508_v28 = vpop.f32.mrb[3].mxu0  ;;  %v194_v30 = vpack.c.bf16 %v192_v29, %v192_v29  ;;  %193 = vst [vmem:[#allocation10] sm:$0xff] %v192_v29 }
 0x144   :  { %526 = vmatmul.mubr.bf16.vlgmr.msra.gmra.mrb[0].mxu1 %v194_v30 }
 0x217   :  { %v293_v32 = vpop.f32.mrb[0].mxu1 }
 0x218   :  { %v299_v33 = vmax.f32 %v293_v32, 0.0  ;;  %v527_v34 = vpop.f32.mrb[1].mxu1 }
 0x219   :  { %v296_v35 = vpop.f32.mrb[2].mxu1 }
 0x21a   :  { %v300_v36 = vpack.c.bf16 %v299_v33, %v299_v33  ;;  %v528_v37 = vpop.f32.mrb[3].mxu1 }
 0x21c   :  { %546 = vmatmul.mubr.bf16.vlgmr.msra.gmra.mrb[4].mxu0 %v300_v36 }
 0x21d   :  { %682 = shalt.err (!%p679_p8)
}
 0x21e   :  { %s683_s18 = scalar_lea.hbm %s880_s4, 128 }
 0x21f   :  { %p684_p9 = scmp.ne.s32.totalorder %s880_s4, %s683_s18  ;;  %p687_p10 = scmp.lt.u32.totalorder %s683_s18, %s880_s4 }
 0x221   :  { %p689_p11 = pnand %p687_p10, %p684_p9 }
 0x223   :  { %692 = shalt.err (!%p689_p11)
}
 0x224   :  { %416 = dma.vmem_to_hbm [thread:$0]  %s414_s28, 128, %s880_s4, [#allocation4]  }
 0x225   :  { %s734_s25 = smov [#allocation11]  }
 0x226   :  { %s423_s26 = sshll.u32 %s734_s25, 4  ;;  %s424_s26 = int_to_ptr.vmem [resolvable:$true] %s423_s26 }
 0x227   :  { %s693_s27 = scalar_lea.vmem %s424_s26, 128  ;;  %p698_p13 = scmp.lt.s32.totalorder %s424_s26, %s424_s26 }
 0x228   :  { %p694_p12 = scmp.ne.s32.totalorder %s424_s26, %s693_s27  ;;  %p699_p0 = scmp.lt.s32.totalorder %s693_s27, %s693_s27 }
 0x22a   :  { %p700_p1 = por %p699_p0, %p698_p13 }
 0x22c   :  { %p701_p2 = pnand %p700_p1, %p694_p12 }
 0x2ef   :  { %v399_v38 = vpop.f32.mrb[4].mxu0 }
 0x2f0   :  { %v405_v39 = vmax.f32 %v399_v38, 0.0  ;;  %v547_v40 = vpop.f32.mrb[5].mxu0 }
 0x2f1   :  { %v402_v41 = vpop.f32.mrb[6].mxu0 }
 0x2f2   :  { %406 = vst [vmem:[#allocation11] sm:$0xff] %v405_v39  ;;  %v548_v42 = vpop.f32.mrb[7].mxu0 }
 0x2f3   :  { %704 = shalt.err (!%p701_p2)
}
 0x2f4   :  { %s705_s4 = scalar_lea.hbm %s881_s5, 128 }
 0x2f5   :  { %p706_p3 = scmp.ne.s32.totalorder %s881_s5, %s705_s4  ;;  %p709_p4 = scmp.lt.u32.totalorder %s705_s4, %s881_s5 }
 0x2f7   :  { %p711_p5 = pnand %p709_p4, %p706_p3 }
 0x2f9   :  { %714 = shalt.err (!%p711_p5)
}
 0x2fa   :  { %426 = dma.vmem_to_hbm [thread:$0]  %s424_s26, 128, %s881_s5, [#allocation12]  }
 0x2fb   :  { %721 = dma.done.wait [#allocation4], 128  }
 0x2fc   :  { %722 = vsyncadd [#allocation4], 4294967168 }
 0x2fd   :  { %723 = dma.done.wait [#allocation12], 128  }
 0x2fe   :  { %724 = vsyncadd [#allocation12], 4294967168 }
 0x2ff   :  { %433 = vsyncpa [#allocation3], 1 }
 0x300   :  { %434 = vsyncpa [#allocation6], 1 }
 0x301   :  { %435 = vsyncpa [#allocation9], 1 }
 0x302   :  { %436 = vsyncpa [#allocation4], 1 }
 0x303   :  { %437 = vsyncpa [#allocation12], 1 }

</bundles_post_ra>
